<compile_context>
chip_gen: v5e
topology: v5e:2x2
jax: 0.10.0
libtpu: 0.0.40
codegen_flags: <defaults>
</compile_context>

<pallas_src>
import jax
import jax.numpy as jnp
from jax.experimental import pallas as pl
from jax.experimental.pallas import tpu as pltpu

_LANE = 128
_MAX_TM = 4096  # 4096 rows * 128 lanes * 4 B = 2 MiB per input tile


def _dice_kernel(pred_ref, targ_ref, out_ref, inter_acc, total_acc):
    """Grid = (batch b [parallel], feature-row chunk k [arbitrary]).

    pred_ref/targ_ref : (1, TM, 128) VMEM tiles of sample b's features
    out_ref           : (1, 1, 128) VMEM tile holding sample b's dice score
                        (broadcast across lanes; resident across the k axis)
    inter_acc         : (1, 128) f32 VMEM — lane-wise partial sum of pred*target
    total_acc         : (1, 128) f32 VMEM — lane-wise partial sum of pred+target
    """
    k = pl.program_id(1)

    @pl.when(k == 0)
    def _():
        inter_acc[...] = jnp.zeros_like(inter_acc)
        total_acc[...] = jnp.zeros_like(total_acc)

    p = pred_ref[...].astype(jnp.float32)  # (1, TM, 128)
    t = targ_ref[...].astype(jnp.float32)

    # Reduce over the sublane (row) axis only; cross-lane reduce happens once
    # at finalize.  Denominator sums are fused into a single accumulator.
    inter_acc[...] += jnp.sum(p * t, axis=1)  # (1, 128)
    total_acc[...] += jnp.sum(p + t, axis=1)  # (1, 128)

    @pl.when(k == pl.num_programs(1) - 1)
    def _():
        smooth = 1.0
        inter = jnp.sum(inter_acc[...])
        total = jnp.sum(total_acc[...])
        score = (2.0 * inter + smooth) / (total + smooth)
        out_ref[...] = jnp.full(out_ref.shape, score, dtype=jnp.float32)


def _choose_tile_rows(rows8):
    """Pick TM (multiple of 8) for the (TM, 128) feature tile.

    - If the whole sample fits in one <=2 MiB tile, use it directly.
    - Otherwise pick the largest candidate tile that keeps zero-padding under
      ~12.5% of the data; 512 rows (0.25 MiB) always satisfies this floor.
    """
    if rows8 <= _MAX_TM:
        return rows8
    for tm in (4096, 2048, 1024, 512):
        padded = ((rows8 + tm - 1) // tm) * tm
        if padded - rows8 <= rows8 // 8:
            return tm
    return 512


def dice_loss_pallas(pred, target):
    """Pallas implementation of DiceLoss.forward(pred, target) (NCHW inputs)."""
    assert pred.shape == target.shape
    b = pred.shape[0]
    pred2 = pred.reshape(b, -1)
    targ2 = target.reshape(b, -1)
    n = pred2.shape[1]

    rows = -(-n // _LANE)              # ceil(N / 128)
    rows8 = ((rows + 7) // 8) * 8      # sublane-align
    tm = _choose_tile_rows(rows8)
    rows_p = ((rows8 + tm - 1) // tm) * tm
    n_pad = rows_p * _LANE

    if n_pad != n:
        # Zero padding is exact: zeros add nothing to sum(p*t) or sum(p+t).
        pad = n_pad - n
        pred2 = jnp.pad(pred2, ((0, 0), (0, pad)))
        targ2 = jnp.pad(targ2, ((0, 0), (0, pad)))

    pred3 = pred2.reshape(b, rows_p, _LANE)
    targ3 = targ2.reshape(b, rows_p, _LANE)
    k_steps = rows_p // tm

    # VMEM worst case: 2 inputs x 2 pipeline buffers x 2 MiB = 8 MiB (<< 32 MiB
    # scoped default even on v7x), so no explicit vmem_limit_bytes needed.
    scores = pl.pallas_call(
        _dice_kernel,
        out_shape=jax.ShapeDtypeStruct((b, 1, _LANE), jnp.float32),
        grid_spec=pltpu.PrefetchScalarGridSpec(
            num_scalar_prefetch=0,
            grid=(b, k_steps),
            in_specs=[
                pl.BlockSpec((1, tm, _LANE), lambda bi, k: (bi, k, 0)),
                pl.BlockSpec((1, tm, _LANE), lambda bi, k: (bi, k, 0)),
            ],
            out_specs=pl.BlockSpec((1, 1, _LANE), lambda bi, k: (bi, 0, 0)),
            scratch_shapes=[
                pltpu.VMEM((1, _LANE), jnp.float32),  # sum(pred * target)
                pltpu.VMEM((1, _LANE), jnp.float32),  # sum(pred + target)
            ],
        ),
        compiler_params=pltpu.CompilerParams(
            # batch axis shards across TensorCores (2x on v7x, harmless on
            # v5e/v6e); the feature-chunk reduction axis stays sequential.
            dimension_semantics=("parallel", "arbitrary"),
        ),
    )(pred3, targ3)

    dice_score = scores[:, 0, 0]            # (B,) per-sample dice scores
    return 1.0 - jnp.sum(dice_score) / b    # tiny mean finished in JAX


def dice_loss_ref(pred, target):
    """Pure-JAX reference matching the PyTorch module exactly."""
    smooth = 1.0
    b = pred.shape[0]
    pred_ = pred.reshape(b, -1)
    target_ = target.reshape(b, -1)
    intersection = pred_ * target_
    dice_score = (2.0 * intersection.sum(1) + smooth) / (
        pred_.sum(1) + target_.sum(1) + smooth
    )
    return 1.0 - dice_score.sum() / b


if __name__ == "__main__":
    key = jax.random.PRNGKey(0)
    k1, k2 = jax.random.split(key)

    B, C, H, W = 2, 4, 16, 16
    # pred ~ sigmoid-like probabilities, target ~ binary mask (typical usage)
    pred = jax.nn.sigmoid(jax.random.normal(k1, (B, C, H, W), dtype=jnp.float32))
    target = (jax.random.uniform(k2, (B, C, H, W)) > 0.5).astype(jnp.float32)

    loss = dice_loss_pallas(pred, target)
    loss = jax.block_until_ready(loss)

    ref = dice_loss_ref(pred, target)
    assert jnp.allclose(loss, ref, atol=1e-5, rtol=1e-5), (loss, ref)

    print("KERNEL_OK")
</pallas_src>

<mosaic_0001>
module attributes {stable_mosaic.version = 11 : i64} {
  func.func @_dice_kernel(%arg0: i32, %arg1: i32, %arg2: memref<1x8x128xf32, #tpu.memory_space<vmem>>, %arg3: memref<1x8x128xf32, #tpu.memory_space<vmem>>, %arg4: memref<1x1x128xf32, #tpu.memory_space<vmem>>, %arg5: memref<1x128xf32, #tpu.memory_space<vmem>>, %arg6: memref<1x128xf32, #tpu.memory_space<vmem>>) attributes {dimension_semantics = [#tpu.dimension_semantics<parallel>, #tpu.dimension_semantics<arbitrary>], iteration_bounds = array<i64: 2, 1>, scalar_prefetch = 0 : i64, scratch_operands = 2 : i64, tpu.core_type = #tpu.core_type<tc>, window_params = [{transform_indices = @transform_0, window_bounds = array<i64: 1, 8, 128>}, {transform_indices = @transform_1, window_bounds = array<i64: 1, 8, 128>}, {transform_indices = @transform_2, window_bounds = array<i64: 1, 1, 128>}]} {
    %c0_i32 = arith.constant 0 : i32
    %0 = arith.cmpi eq, %arg1, %c0_i32 : i32
    %1 = arith.extui %0 : i1 to i32
    %c0_i32_0 = arith.constant 0 : i32
    %2 = arith.cmpi ne, %1, %c0_i32_0 : i32
    scf.if %2 {
      %cst_17 = arith.constant 0.000000e+00 : f32
      %18 = vector.broadcast %cst_17 : f32 to vector<1x128xf32>
      %c0_18 = arith.constant 0 : index
      %c0_19 = arith.constant 0 : index
      %19 = vector.load %arg5[%c0_18, %c0_19] : memref<1x128xf32, #tpu.memory_space<vmem>>, vector<1x128xf32>
      tpu.vector_store %arg5[%c0_18, %c0_19], %18 {strides = array<i32>} : memref<1x128xf32, #tpu.memory_space<vmem>>, vector<1x128xf32>,
      %cst_20 = arith.constant 0.000000e+00 : f32
      %20 = vector.broadcast %cst_20 : f32 to vector<1x128xf32>
      %c0_21 = arith.constant 0 : index
      %c0_22 = arith.constant 0 : index
      %21 = vector.load %arg6[%c0_21, %c0_22] : memref<1x128xf32, #tpu.memory_space<vmem>>, vector<1x128xf32>
      tpu.vector_store %arg6[%c0_21, %c0_22], %20 {strides = array<i32>} : memref<1x128xf32, #tpu.memory_space<vmem>>, vector<1x128xf32>,
    } else {
    }
    %c0 = arith.constant 0 : index
    %c0_1 = arith.constant 0 : index
    %c0_2 = arith.constant 0 : index
    %3 = vector.load %arg2[%c0, %c0_1, %c0_2] : memref<1x8x128xf32, #tpu.memory_space<vmem>>, vector<1x8x128xf32>
    %c0_3 = arith.constant 0 : index
    %c0_4 = arith.constant 0 : index
    %c0_5 = arith.constant 0 : index
    %4 = vector.load %arg3[%c0_3, %c0_4, %c0_5] : memref<1x8x128xf32, #tpu.memory_space<vmem>>, vector<1x8x128xf32>
    %c0_6 = arith.constant 0 : index
    %c0_7 = arith.constant 0 : index
    %5 = vector.load %arg5[%c0_6, %c0_7] : memref<1x128xf32, #tpu.memory_space<vmem>>, vector<1x128xf32>
    %6 = arith.mulf %3, %4 : vector<1x8x128xf32>
    %cst = arith.constant dense<0.000000e+00> : vector<1x128xf32>
    %7 = vector.multi_reduction <add>, %6, %cst [1] : vector<1x8x128xf32> to vector<1x128xf32>
    %8 = arith.addf %5, %7 : vector<1x128xf32>
    %c0_8 = arith.constant 0 : index
    %c0_9 = arith.constant 0 : index
    %9 = vector.load %arg5[%c0_8, %c0_9] : memref<1x128xf32, #tpu.memory_space<vmem>>, vector<1x128xf32>
    tpu.vector_store %arg5[%c0_8, %c0_9], %8 {strides = array<i32>} : memref<1x128xf32, #tpu.memory_space<vmem>>, vector<1x128xf32>,
    %c0_10 = arith.constant 0 : index
    %c0_11 = arith.constant 0 : index
    %10 = vector.load %arg6[%c0_10, %c0_11] : memref<1x128xf32, #tpu.memory_space<vmem>>, vector<1x128xf32>
    %11 = arith.addf %3, %4 : vector<1x8x128xf32>
    %cst_12 = arith.constant dense<0.000000e+00> : vector<1x128xf32>
    %12 = vector.multi_reduction <add>, %11, %cst_12 [1] : vector<1x8x128xf32> to vector<1x128xf32>
    %13 = arith.addf %10, %12 : vector<1x128xf32>
    %c0_13 = arith.constant 0 : index
    %c0_14 = arith.constant 0 : index
    %14 = vector.load %arg6[%c0_13, %c0_14] : memref<1x128xf32, #tpu.memory_space<vmem>>, vector<1x128xf32>
    tpu.vector_store %arg6[%c0_13, %c0_14], %13 {strides = array<i32>} : memref<1x128xf32, #tpu.memory_space<vmem>>, vector<1x128xf32>,
    %c0_i32_15 = arith.constant 0 : i32
    %15 = arith.cmpi eq, %arg1, %c0_i32_15 : i32
    %16 = arith.extui %15 : i1 to i32
    %c0_i32_16 = arith.constant 0 : i32
    %17 = arith.cmpi ne, %16, %c0_i32_16 : i32
    scf.if %17 {
      %c0_17 = arith.constant 0 : index
      %c0_18 = arith.constant 0 : index
      %18 = vector.load %arg5[%c0_17, %c0_18] : memref<1x128xf32, #tpu.memory_space<vmem>>, vector<1x128xf32>
      %19 = vector.shape_cast %18 : vector<1x128xf32> to vector<1x1x128xf32>
      %cst_19 = arith.constant dense<0.000000e+00> : vector<1xf32>
      %20 = vector.multi_reduction <add>, %19, %cst_19 [1, 2] : vector<1x1x128xf32> to vector<1xf32>
      %21 = vector.shape_cast %20 : vector<1xf32> to vector<1x1x1xf32>
      %22 = vector.extract %21[0, 0, 0] : f32 from vector<1x1x1xf32>
      %c0_20 = arith.constant 0 : index
      %c0_21 = arith.constant 0 : index
      %23 = vector.load %arg6[%c0_20, %c0_21] : memref<1x128xf32, #tpu.memory_space<vmem>>, vector<1x128xf32>
      %24 = vector.shape_cast %23 : vector<1x128xf32> to vector<1x1x128xf32>
      %cst_22 = arith.constant dense<0.000000e+00> : vector<1xf32>
      %25 = vector.multi_reduction <add>, %24, %cst_22 [1, 2] : vector<1x1x128xf32> to vector<1xf32>
      %26 = vector.shape_cast %25 : vector<1xf32> to vector<1x1x1xf32>
      %27 = vector.extract %26[0, 0, 0] : f32 from vector<1x1x1xf32>
      %cst_23 = arith.constant 2.000000e+00 : f32
      %28 = arith.mulf %cst_23, %22 : f32
      %cst_24 = arith.constant 1.000000e+00 : f32
      %29 = arith.addf %28, %cst_24 : f32
      %cst_25 = arith.constant 1.000000e+00 : f32
      %30 = arith.addf %27, %cst_25 : f32
      %31 = arith.divf %29, %30 : f32
      %32 = vector.broadcast %31 : f32 to vector<1x1x128xf32>
      %c0_26 = arith.constant 0 : index
      %c0_27 = arith.constant 0 : index
      %c0_28 = arith.constant 0 : index
      %33 = vector.load %arg4[%c0_26, %c0_27, %c0_28] : memref<1x1x128xf32, #tpu.memory_space<vmem>>, vector<1x1x128xf32>
      tpu.vector_store %arg4[%c0_26, %c0_27, %c0_28], %32 {strides = array<i32>} : memref<1x1x128xf32, #tpu.memory_space<vmem>>, vector<1x1x128xf32>,
    } else {
    }
    return
  }
  func.func @transform_0(%arg0: i32, %arg1: i32) -> (i32, i32, i32) {
    %c0_i32 = arith.constant 0 : i32
    %c0_i32_0 = arith.constant 0 : i32
    return %arg0, %arg1, %c0_i32 : i32, i32, i32
  }
  func.func @transform_1(%arg0: i32, %arg1: i32) -> (i32, i32, i32) {
    %c0_i32 = arith.constant 0 : i32
    %c0_i32_0 = arith.constant 0 : i32
    return %arg0, %arg1, %c0_i32 : i32, i32, i32
  }
  func.func @transform_2(%arg0: i32, %arg1: i32) -> (i32, i32, i32) {
    %c0_i32 = arith.constant 0 : i32
    %c0_i32_0 = arith.constant 0 : i32
    %c0_i32_1 = arith.constant 0 : i32
    return %arg0, %c0_i32, %c0_i32_0 : i32, i32, i32
  }
}

</mosaic_0001>

<bundles_post_ra>
// kernel: tpu_custom_call.1
= control target key start
LH: loop header
LB: loop body
LE: loop exit
PB: predicated region body
PF: predicated region fallthrough
CT: control target
= control target key end

     0   :  { %7 = vsyncpa [#allocation5], 0  ;;  %s787_s0 = inlined_call_operand.hbm [shape: f32[2,8,128], index: 0, kind: input, shape index: {}]   ;;  %s788_s1 = inlined_call_operand.hbm [shape: f32[2,8,128], index: 1, kind: input, shape index: {}]   ;;  %s789_s2 = inlined_call_operand.hbm [shape: f32[2,1,128], index: 2, kind: output, shape index: {}]  }
   0x1   :  { %9 = vsyncpa [#allocation5 + $0x1], 0 }
   0x2   :  { %10 = vsyncpa [#allocation8], 0 }
   0x3   :  { %12 = vsyncpa [#allocation8 + $0x1], 0 }
   0x4   :  { %13 = vsyncpa [#allocation6], 0 }
   0x5   :  { %15 = vsyncpa [#allocation6 + $0x1], 0  ;;  %s658_s9 = smov 0   ;;  %s660_s10 = smov 0  }
   0x6   :  { %s662_s11 = smov 0   ;;  %s664_s12 = smov 0  }
   0x7   :  { %s666_s13 = smov 0   ;;  %s668_s14 = smov 0  }
   0x8 LB: > { %s405_s15 = sadd.s32 4294967295, %s640_s14   ;;  %s406_s16 = sadd.s32 4294967294, %s640_s14   ;;  %s640_s14 = sphi %s668_s14, %s21_s14   ;;  %s636_s13 = sphi %s666_s13, %s798_s13   ;;  %s632_s12 = sphi %s664_s12, %s797_s12   ;;  %s628_s11 = sphi %s662_s11, %s796_s11   ;;  %s624_s10 = sphi %s660_s10, %s795_s10   ;;  %s620_s9 = sphi %s658_s9, %s794_s9  }
   0x9   : > { %s33_s17 = sadd.s32 1, %s636_s13  ;;  %s42_s18 = sadd.s32 1, %s628_s11 }
   0xa   : > { %p35_p0 = scmp.ge.s32.totalorder %s33_s17, 2  ;;  %p49_p1 = scmp.ne.s32.totalorder %s628_s11, %s624_s10 }
   0xb   : > { %p50_p2 = scmp.eq.s32.totalorder %s640_s14, 0  ;;  %p55_p3 = scmp.ne.s32.totalorder %s624_s10, %s620_s9 }
   0xc   : > { %s800_s17 = smov (%p35_p0, %s33_s17), 0  ;;  %p56_p5 = scmp.eq.s32.totalorder %s405_s15, 0 }
   0xd   : > { %p699_p4 = por %p50_p2, %p49_p1  ;;  %s37_s20 = ssub.s32 %s636_s13, %s800_s17 }
   0xe   : > { %p107_p6 = scmp.eq.s32.totalorder %s405_s15, 1  ;;  %p40_p7 = scmp.eq.s32.totalorder %s37_s20, 0 }
   0xf   : > { %p705_p8 = por %p56_p5, %p55_p3  ;;  %p113_p10 = scmp.eq.s32.totalorder %s406_s16, 1 }
  0x10   : > { %p709_p9 = por %p107_p6, %p49_p1  ;;  %p408_p12 = scmp.ge.s32.totalorder %s640_s14, 2 }
  0x11   : > { %s714_s23 = scalar_select %p40_p7, %s628_s11, %s42_s18  }
  0x12   : > { %p716_p11 = por %p113_p10, %p55_p3  ;;  %p441_p13 = scmp.lt.s32.totalorder %s640_s14, 2 }
  0x13   : > { %s133_s25 = sand.u32 1, %s628_s11   ;;  %s410_s27 = sshll.u32 %s636_s13, 3 }
  0x14   : > { %s409_s26 = sshll.u32 %s133_s25, 3  ;;  %s142_s30 = scalar_lea.hbm %s787_s0, %s410_s27 }
  0x15   : > { %s137_s3 = scalar_lea.vmem [#allocation4], %s409_s26  ;;  %s144_s5 = sshll.u32 %s142_s30, 4  ;;  %s145_s5 = int_to_ptr.hbm [resolvable:$true] %s144_s5 }
  0x16   : > { %s146_s4 = sshll.u32 %s137_s3, 4  ;;  %p431_p0 = pnand %p441_p13, %p699_p4  ;;  %s147_s4 = int_to_ptr.vmem [resolvable:$true] %s146_s4 }
  0x17   : > { %p413_p1 = scmp.ge.s32.totalorder %s640_s14, 1  ;;  %p171_p2 = scmp.lt.s32.totalorder %s640_s14, 3 }
  0x18   : > { %s134_s6 = scalar_lea.sflag [#allocation5], %s133_s25  ;;  %s162_s15 = scalar_lea.hbm %s788_s1, %s410_s27 }
  0x19   : > { %433 = dma.hbm_to_vmem [thread:$0]  (!%p431_p0), %s145_s5, 128, %s147_s4, %s134_s6  }
  0x1a   : > { %p172_p3 = pnand %p413_p1, %p171_p2  ;;  %s157_s16 = scalar_lea.vmem [#allocation7], %s409_s26 }
  0x1b   : > { %s166_s18 = sshll.u32 %s157_s16, 4  ;;  %s164_s20 = sshll.u32 %s162_s15, 4  ;;  %s167_s18 = int_to_ptr.vmem [resolvable:$true] %s166_s18  ;;  %s165_s20 = int_to_ptr.hbm [resolvable:$true] %s164_s20 }
  0x1c   : > { %s154_s28 = scalar_lea.sflag [#allocation8], %s133_s25  ;;  %175 = sbr.rel (%p172_p3) target bundleno = 324 (0x144), region = 28 }
  0x1d   : > { %436 = dma.hbm_to_vmem [thread:$0]  (!%p431_p0), %s165_s20, 128, %s167_s18, %s154_s28  }
  0x1e   : > { %s735_s19 = sand.u32 (!%p172_p3), 1, %s624_s10  }
  0x1f   : > { %s414_s29 = sshll.u32 (!%p172_p3), %s735_s19, 3  ;;  %s178_s30 = scalar_lea.sflag (!%p172_p3), [#allocation5], %s735_s19 }
  0x20   : > { %s181_s3 = scalar_lea.vmem (!%p172_p3), [#allocation4], %s414_s29 }
  0x21   : > { %607 = dma.done.wait (%p705_p8), %s178_s30, 128  }
  0x22   : > { %609 = vsyncadd (%p705_p8), %s178_s30, 4294967168  ;;  %s188_s26 = scalar_lea.sflag [#allocation8], %s735_s19  ;;  %s191_s25 = scalar_lea.vmem [#allocation7], %s414_s29 }
  0x23   : > { %611 = dma.done.wait (%p705_p8), %s188_s26, 128  }
  0x24   : > { %613 = vsyncadd (%p705_p8), %s188_s26, 4294967168  ;;  %v642_v0 = vmov 0.0   ;;  %v223_v1 = vld [vmem:[%s181_s3] sm:$0xff]  ;;  %v224_v2 = vld [vmem:[%s191_s25] sm:$0xff]  ;;  %vm249_vm0 = vcmask 1040384   ;;  %s302_s8 = scalar_lea.hbm %s789_s2, %s632_s12  ;;  %s216_s15 = scalar_lea.vmem [#allocation9], %s735_s19 }
  0x25   : > { %221 = vst [vmem:[#allocation2] sm:$0x1] %v642_v0  ;;  %v226_v3 = vmul.f32 %v224_v2, %v223_v1  ;;  %v236_v4 = vadd.f32 %v224_v2, %v223_v1  ;;  %s304_s16 = sshll.u32 %s216_s15, 4  ;;  %s306_s20 = sshll.u32 %s302_s8, 4  ;;  %s305_s16 = int_to_ptr.vmem [resolvable:$true] %s304_s16  ;;  %s307_s20 = int_to_ptr.hbm [resolvable:$true] %s306_s20 }
  0x26   : > { %222 = vst [vmem:[#allocation3] sm:$0x1] %v642_v0  ;;  %s294_s30 = scalar_lea.sflag [#allocation6], %s735_s19  ;;  %s568_s3 = sshra.s32 %s307_s20, 4  ;;  %s569_s3 = int_to_ptr.hbm [resolvable:$true] %s568_s3 }
  0x27   : > { %v227_v5 = vrot.slane %v226_v3, 4  ;;  %v237_v6 = vrot.slane %v236_v4, 4  ;;  %s570_s26 = scalar_lea.hbm %s569_s3, 1  ;;  %p575_p7 = scmp.lt.s32.totalorder %s569_s3, %s789_s2 }
  0x28   : > { %p571_p4 = scmp.ne.s32.totalorder %s569_s3, %s570_s26 }
  0x29   : > { %v228_v7 = vadd.f32 %v227_v5, %v226_v3  ;;  %v238_v8 = vadd.f32 %v237_v6, %v236_v4 }
  0x2a   : > { %p572_p5 = pnand %p571_p4, %p709_p9 }
  0x2b   : > { %v229_v9 = vrot.slane %v228_v7, 2  ;;  %v239_v10 = vrot.slane %v238_v8, 2 }
  0x2c   : > { %v225_v15 = vld [vmem:[#allocation2] sm:$0x1]  ;;  %p573_p6 = pneg %p572_p5 }
  0x2d   : > { %v230_v11 = vadd.f32 %v229_v9, %v228_v7  ;;  %v240_v12 = vadd.f32 %v239_v10, %v238_v8  ;;  %v235_v16 = vld [vmem:[#allocation3] sm:$0x1] }
  0x2f   : > { %v231_v13 = vrot.slane %v230_v11, 1  ;;  %v241_v14 = vrot.slane %v240_v12, 1 }
  0x31   : > { %v232_v17 = vadd.f32 %v231_v13, %v230_v11  ;;  %v242_v18 = vadd.f32 %v241_v14, %v240_v12 }
  0x33   : > { %v233_v19 = vadd.f32 %v232_v17, %v225_v15  ;;  %v243_v20 = vadd.f32 %v242_v18, %v235_v16 }
  0x35   : > { %234 = vst [vmem:[#allocation2] sm:$0x1] %v233_v19 }
  0x36   : > { %244 = vst [vmem:[#allocation3] sm:$0x1] %v243_v20 }
  0x3c   : > { %v248_v21 = vld [vmem:[#allocation2] sm:$0x1] }
  0x3d   : > { %v250_v22 = vsel %vm249_vm0, %v248_v21, 0.0  ;;  %v260_v23 = vld [vmem:[#allocation3] sm:$0x1] }
  0x3e   : > { %251 = vadd.xlane.f32.xlu0 %v250_v22  ;;  %v261_v24 = vsel %vm249_vm0, %v260_v23, 0.0 }
  0x46   : > { %262 = vadd.xlane.f32.xlu0 %v261_v24 }
  0xb1   : > { %v252_v25 = vpop.xlane.xlu0 %251 }
  0xb2   : > { %v253_v26 = vrot.slane %v252_v25, 4 }
  0xb4   : > { %v254_v27 = vadd.f32 %v253_v26, %v252_v25 }
  0xb6   : > { %v255_v28 = vrot.slane %v254_v27, 2 }
  0xb8   : > { %v256_v29 = vadd.f32 %v255_v28, %v254_v27 }
  0xb9   : > { %v263_v30 = vpop.xlane.xlu0 %262 }
  0xba   : > { %v264_v31 = vrot.slane %v263_v30, 4  ;;  %v257_v32 = vrot.slane %v256_v29, 1 }
  0xbc   : > { %v265_v33 = vadd.f32 %v264_v31, %v263_v30  ;;  %v258_v34 = vadd.f32 %v257_v32, %v256_v29 }
  0xbe   : > { %v266_v35 = vrot.slane %v265_v33, 2  ;;  %418 = vpush %v258_v34 }
  0xc0   : > { %v267_v36 = vadd.f32 %v266_v35, %v265_v33 }
  0xc2   : > { %v268_v37 = vrot.slane %v267_v36, 1 }
  0xc4   : > { %v269_v38 = vadd.f32 %v268_v37, %v267_v36 }
  0xc6   : > { %420 = vpush %v269_v38 }
  0xef   : > { %s419_s21 = spop %418 }
  0xf0   : > { %s271_s5 = smul.f32 2.0, %s419_s21  ;;  %s574_s21 = scalar_lea.hbm %s789_s2, 2 }
  0xf1   : > { %p576_p8 = scmp.lt.s32.totalorder %s574_s21, %s570_s26 }
  0xf2   : > { %s272_s18 = sadd.f32 1.0, %s271_s5 }
  0xf3   : > { %p577_p10 = por %p576_p8, %p575_p7 }
  0xf5   : > { %p578_p13 = pnand %p577_p10, %p573_p6 }
  0xf7   : > { %s421_s27 = spop %420 }
  0xf8   : > { %s273_s4 = sadd.f32 1.0, %s421_s27 }
  0xfa   : > { %v274_v39 = vstv %s273_s4 }
  0xfb   : > { %492 = vrcp.f32 %v274_v39  ;;  %v286_v43 = vand.u32 2147483648, %v274_v39  ;;  %v284_v45 = vand.u32 2147483647, %v274_v39  ;;  %vm280_vm2 = vweird.f32 %v274_v39 }
  0xfd   : > { %v287_v47 = vor.u32 1.1754944e-38, %v286_v43  ;;  %vm285_vm4 = vcmp.eq.f32.partialorder %v284_v45, 8.507059e+37 }
 0x101   : > { %v493_v40 = vpop.eup %492 }
 0x102   : > { %v276_v41 = vmul.f32 %v493_v40, %v274_v39  ;;  %vm281_vm1 = vweird.f32 %v493_v40 }
 0x103   : > { %vm282_vm3 = vmor %vm280_vm2, %vm281_vm1 }
 0x104   : > { %v277_v42 = vsub.f32 1.0, %v276_v41 }
 0x106   : > { %v278_v44 = vmul.f32 %v493_v40, %v277_v42 }
 0x108   : > { %v279_v46 = vadd.f32 %v493_v40, %v278_v44 }
 0x10a   : > { %v283_v48 = vsel %vm282_vm3, %v493_v40, %v279_v46 }
 0x10b   : > { %v288_v49 = vsel %vm285_vm4, %v287_v47, %v283_v48 }
 0x10c   : > { %422 = vpush %v288_v49 }
 0x13d   : > { %s423_s28 = spop %422 }
 0x13e   : > { %s290_s29 = smul.f32 %s423_s28, %s272_s18 }
 0x140   : > { %v291_v50 = vstv %s290_s29 }
 0x141   : > { %292 = vst [vmem:[%s216_s15] sm:$0x1] %v291_v50 }
 0x142   : > { %581 = shalt.err (!%p578_p13)
}
 0x143   : > { %428 = dma.vmem_to_hbm [thread:$0]  (%p709_p9), %s305_s16, 16, %s307_s20, %s294_s30  }
 0x144 PF: > { %s318_s19 = sand.u32 1, %s620_s9   ;;  %p438_p0 = pnand %p408_p12, %p716_p11 }
 0x145   : > { %s319_s5 = scalar_lea.sflag [#allocation6], %s318_s19 }
 0x146   : > { %p439_p1 = pneg %p438_p0 }
 0x148   : > { %615 = dma.done.wait (%p439_p1), %s319_s5, 16  }
 0x149   : > { %617 = vsyncadd (%p439_p1), %s319_s5, 4294967280  ;;  %s21_s14 = sadd.s32 1, %s640_s14   ;;  %s794_s9 = smov %s624_s10 }
 0x14a   : > { %p18_p2 = scmp.ge.s32.totalorder %s21_s14, 4   ;;  %s795_s10 = smov %s628_s11 }
 0x14b   : > { %s796_s11 = smov %s714_s23  ;;  %s797_s12 = smov %s636_s13 }
 0x14c   : > { %s798_s13 = smov %s800_s17  ;;  %20 = sbr.rel (!%p18_p2) target bundleno = 8 (0x8), region = 94 }
 0x151   :  { %324 = vsyncpa [#allocation5], 1 }
 0x152   :  { %326 = vsyncpa [#allocation5 + $0x1], 1 }
 0x153   :  { %327 = vsyncpa [#allocation8], 1 }
 0x154   :  { %329 = vsyncpa [#allocation8 + $0x1], 1 }
 0x155   :  { %330 = vsyncpa [#allocation6], 1 }
 0x156   :  { %332 = vsyncpa [#allocation6 + $0x1], 1 }

</bundles_post_ra>
